<compile_context>
chip_gen: v7x
topology: tpu7x:2x2x1
jax: 0.10.0
libtpu: 0.0.40
codegen_flags: <defaults>
</compile_context>

<pallas_src>
import math

import jax
import jax.numpy as jnp
from jax.experimental import pallas as pl
from jax.experimental.pallas import tpu as pltpu

KERNEL = 3
STRIDE = 3  # PyTorch MaxPool2d default stride == kernel_size


def _out_dim_ceil(size, k, s):
    # ceil_mode=True output size (PyTorch semantics, no padding).
    # NOTE: valid as-is only for stride == kernel_size (every ceil-mode
    # window starts inside the input); generalizing stride would need the
    # "window must start inside input" drop rule.
    return math.ceil((size - k) / s) + 1


def _ds(start, size):
    # Window-strided index along W; stride only matters when size > 1.
    # TODO(synk): for large W (OWf > 1) verify the strided-sublane slice
    # lowering in the Mosaic dump; if it materializes per-offset copies,
    # switch to contiguous row loads + in-register windowing.  Never hit for
    # the module's fixed 5x5 planes (OWf == 1 -> contiguous unit slices).
    if size == 1:
        return pl.ds(start, 1)
    return pl.ds(start, size, stride=STRIDE)


def _tree_max(parts):
    # Pairwise tree reduction: dependent-op chain ~log2(k^2) instead of k^2-1.
    parts = list(parts)
    while len(parts) > 1:
        nxt = [jnp.maximum(parts[i], parts[i + 1])
               for i in range(0, len(parts) - 1, 2)]
        if len(parts) % 2:
            nxt.append(parts[-1])
        parts = nxt
    return parts[0]


def _make_maxpool_kernel(H, W, OH, OW):
    OWf = W // STRIDE              # count of full 3-wide windows along W
    rw = W - OWf * STRIDE          # ragged right remainder (ceil_mode window)

    def maxpool_kernel(x_ref, o_ref):
        # x_ref: (H, W, TB) lane-dense batch; o_ref: (OH*OW, TB) flat output
        # rows in row-major (oh, ow) order -> lane-dense stores.
        def window_row_max(h0, kh_n, w0, nw, kw_n):
            # (nw, TB) maxima of a kh_n x kw_n window for nw output columns.
            parts = [x_ref[h0 + kh, _ds(w0 + kw, nw), :]
                     for kh in range(kh_n) for kw in range(kw_n)]
            return _tree_max(parts)

        for oh in range(OH):                       # static unroll (tiny OH)
            h0 = oh * STRIDE
            kh_n = min(KERNEL, H - h0)             # ragged bottom row -> shorter window
            base = oh * OW                         # flat row offset for this oh
            if OWf > 0:                            # full 3-wide windows
                o_ref[pl.ds(base, OWf), :] = window_row_max(h0, kh_n, 0, OWf, KERNEL)
            if rw > 0:                             # ragged right window
                o_ref[pl.ds(base + OWf, 1), :] = window_row_max(
                    h0, kh_n, OWf * STRIDE, 1, rw)

    return maxpool_kernel


def _num_tensorcores_per_chip():
    try:
        kind = jax.devices()[0].device_kind.lower()
    except Exception:  # pragma: no cover - be conservative off-TPU
        return 1
    return 2 if ("v7" in kind or "7x" in kind) else 1


def _select_tiling(B, H, W, OH, OW, dtype_bytes):
    """Pick (tb, padded_B, grid) from VMEM budget + TensorCore count."""
    # Per-step VMEM: double-buffered input tile + output tile.
    per_lane = 2 * (H * W + OH * OW) * dtype_bytes
    # 12 MiB fits under the default scoped-VMEM limit on every generation
    # (16 MiB v5e, 32 MiB v6e/v7x; v7x physical is 64 MiB per TC).
    vmem_budget = 12 << 20
    tb_vmem = max(128, (vmem_budget // per_lane) // 128 * 128)

    num_tc = _num_tensorcores_per_chip()
    b128 = pl.cdiv(B, 128) * 128
    if num_tc > 1 and b128 >= num_tc * 128:
        # v7x: one large step per TensorCore, sharded via "parallel".
        tb = min(pl.cdiv(b128, num_tc * 128) * 128, tb_vmem)
    else:
        # v5e / v6e: single TensorCore -> one big step, no extra grid overhead.
        tb = min(b128, tb_vmem)
    bp = pl.cdiv(B, tb) * tb
    return tb, bp, bp // tb


def maxpool2d_ceil(x):
    """x: (N, C, H, W) -> (N, C, OH, OW); MaxPool2d(k=3, stride=3, ceil_mode=True)."""
    N, C, H, W = x.shape
    OH = _out_dim_ceil(H, KERNEL, STRIDE)
    OW = _out_dim_ceil(W, KERNEL, STRIDE)
    B = N * C
    dtype_bytes = jnp.dtype(x.dtype).itemsize

    tb, Bp, grid_n = _select_tiling(B, H, W, OH, OW, dtype_bytes)

    # Lane-dense layout: plane index on the last (lane) axis.
    x_t = jnp.transpose(x.reshape(B, H, W), (1, 2, 0))            # (H, W, B)
    if Bp != B:
        # Padded lanes compute garbage maxima that are sliced off below.
        x_t = jnp.pad(x_t, ((0, 0), (0, 0), (0, Bp - B)))

    out_flat = pl.pallas_call(
        _make_maxpool_kernel(H, W, OH, OW),
        out_shape=jax.ShapeDtypeStruct((OH * OW, Bp), x.dtype),
        grid=(grid_n,),
        in_specs=[pl.BlockSpec((H, W, tb), lambda b: (0, 0, b))],
        out_specs=pl.BlockSpec((OH * OW, tb), lambda b: (0, b)),
        compiler_params=pltpu.CompilerParams(
            dimension_semantics=("parallel",),
            # Let XLA fuse the input transpose into the pallas_call operand.
            allow_input_fusion=[True],
        ),
    )(x_t)

    out = jnp.transpose(out_flat[:, :B], (1, 0))                  # (B, OH*OW)
    return out.reshape(N, C, OH, OW)


def _reference_maxpool(x):
    # pure-JAX reference (same ceil_mode semantics) for a sanity check
    N, C, H, W = x.shape
    OH = _out_dim_ceil(H, KERNEL, STRIDE)
    OW = _out_dim_ceil(W, KERNEL, STRIDE)
    out = jnp.zeros((N, C, OH, OW), dtype=x.dtype)
    for oh in range(OH):
        for ow in range(OW):
            h0, h1 = oh * STRIDE, min(oh * STRIDE + KERNEL, H)
            w0, w1 = ow * STRIDE, min(ow * STRIDE + KERNEL, W)
            out = out.at[:, :, oh, ow].set(
                jnp.max(x[:, :, h0:h1, w0:w1], axis=(2, 3)))
    return out


if __name__ == "__main__":
    key = jax.random.PRNGKey(0)
    # The module reshapes its input to (-1, 1, 5, 5); 512 planes keeps the
    # test small while giving the lane-dense batch tiling real work
    # (1 grid step on v5e/v6e, 2 on v7x).
    x = jax.random.normal(key, (512, 1, 5, 5), dtype=jnp.float32)

    out = maxpool2d_ceil(x)
    out = jax.block_until_ready(out)

    ref = _reference_maxpool(x)
    assert out.shape == (512, 1, 2, 2), out.shape
    assert jnp.allclose(out, ref), "mismatch vs reference"

    print("KERNEL_OK")
</pallas_src>

<mosaic_0001>
module attributes {stable_mosaic.version = 11 : i64} {
  func.func @maxpool_kernel(%arg0: i32, %arg1: memref<5x5x512xf32, #tpu.memory_space<vmem>>, %arg2: memref<4x512xf32, #tpu.memory_space<vmem>>) attributes {dimension_semantics = [#tpu.dimension_semantics<parallel>], iteration_bounds = array<i64: 1>, scalar_prefetch = 0 : i64, scratch_operands = 0 : i64, tpu.core_type = #tpu.core_type<tc>, window_params = [{transform_indices = @transform_0, window_bounds = array<i64: 5, 5, 512>}, {transform_indices = @transform_1, window_bounds = array<i64: 4, 512>}]} {
    %c0 = arith.constant 0 : index
    %c0_0 = arith.constant 0 : index
    %c0_1 = arith.constant 0 : index
    %0 = vector.load %arg1[%c0, %c0_0, %c0_1] : memref<5x5x512xf32, #tpu.memory_space<vmem>>, vector<1x1x512xf32>
    %1 = vector.shape_cast %0 : vector<1x1x512xf32> to vector<1x512xf32>
    %c0_2 = arith.constant 0 : index
    %c1 = arith.constant 1 : index
    %c0_3 = arith.constant 0 : index
    %2 = vector.load %arg1[%c0_2, %c1, %c0_3] : memref<5x5x512xf32, #tpu.memory_space<vmem>>, vector<1x1x512xf32>
    %3 = vector.shape_cast %2 : vector<1x1x512xf32> to vector<1x512xf32>
    %c0_4 = arith.constant 0 : index
    %c2 = arith.constant 2 : index
    %c0_5 = arith.constant 0 : index
    %4 = vector.load %arg1[%c0_4, %c2, %c0_5] : memref<5x5x512xf32, #tpu.memory_space<vmem>>, vector<1x1x512xf32>
    %5 = vector.shape_cast %4 : vector<1x1x512xf32> to vector<1x512xf32>
    %c1_6 = arith.constant 1 : index
    %c0_7 = arith.constant 0 : index
    %c0_8 = arith.constant 0 : index
    %6 = vector.load %arg1[%c1_6, %c0_7, %c0_8] : memref<5x5x512xf32, #tpu.memory_space<vmem>>, vector<1x1x512xf32>
    %7 = vector.shape_cast %6 : vector<1x1x512xf32> to vector<1x512xf32>
    %c1_9 = arith.constant 1 : index
    %c1_10 = arith.constant 1 : index
    %c0_11 = arith.constant 0 : index
    %8 = vector.load %arg1[%c1_9, %c1_10, %c0_11] : memref<5x5x512xf32, #tpu.memory_space<vmem>>, vector<1x1x512xf32>
    %9 = vector.shape_cast %8 : vector<1x1x512xf32> to vector<1x512xf32>
    %c1_12 = arith.constant 1 : index
    %c2_13 = arith.constant 2 : index
    %c0_14 = arith.constant 0 : index
    %10 = vector.load %arg1[%c1_12, %c2_13, %c0_14] : memref<5x5x512xf32, #tpu.memory_space<vmem>>, vector<1x1x512xf32>
    %11 = vector.shape_cast %10 : vector<1x1x512xf32> to vector<1x512xf32>
    %c2_15 = arith.constant 2 : index
    %c0_16 = arith.constant 0 : index
    %c0_17 = arith.constant 0 : index
    %12 = vector.load %arg1[%c2_15, %c0_16, %c0_17] : memref<5x5x512xf32, #tpu.memory_space<vmem>>, vector<1x1x512xf32>
    %13 = vector.shape_cast %12 : vector<1x1x512xf32> to vector<1x512xf32>
    %c2_18 = arith.constant 2 : index
    %c1_19 = arith.constant 1 : index
    %c0_20 = arith.constant 0 : index
    %14 = vector.load %arg1[%c2_18, %c1_19, %c0_20] : memref<5x5x512xf32, #tpu.memory_space<vmem>>, vector<1x1x512xf32>
    %15 = vector.shape_cast %14 : vector<1x1x512xf32> to vector<1x512xf32>
    %c2_21 = arith.constant 2 : index
    %c2_22 = arith.constant 2 : index
    %c0_23 = arith.constant 0 : index
    %16 = vector.load %arg1[%c2_21, %c2_22, %c0_23] : memref<5x5x512xf32, #tpu.memory_space<vmem>>, vector<1x1x512xf32>
    %17 = vector.shape_cast %16 : vector<1x1x512xf32> to vector<1x512xf32>
    %18 = arith.maximumf %1, %3 : vector<1x512xf32>
    %19 = arith.maximumf %5, %7 : vector<1x512xf32>
    %20 = arith.maximumf %9, %11 : vector<1x512xf32>
    %21 = arith.maximumf %13, %15 : vector<1x512xf32>
    %22 = arith.maximumf %18, %19 : vector<1x512xf32>
    %23 = arith.maximumf %20, %21 : vector<1x512xf32>
    %24 = arith.maximumf %22, %23 : vector<1x512xf32>
    %25 = arith.maximumf %24, %17 : vector<1x512xf32>
    %c0_24 = arith.constant 0 : index
    %c0_25 = arith.constant 0 : index
    %26 = vector.load %arg2[%c0_24, %c0_25] : memref<4x512xf32, #tpu.memory_space<vmem>>, vector<1x512xf32>
    tpu.vector_store %arg2[%c0_24, %c0_25], %25 {strides = array<i32>} : memref<4x512xf32, #tpu.memory_space<vmem>>, vector<1x512xf32>,
    %c0_26 = arith.constant 0 : index
    %c3 = arith.constant 3 : index
    %c0_27 = arith.constant 0 : index
    %27 = vector.load %arg1[%c0_26, %c3, %c0_27] : memref<5x5x512xf32, #tpu.memory_space<vmem>>, vector<1x1x512xf32>
    %28 = vector.shape_cast %27 : vector<1x1x512xf32> to vector<1x512xf32>
    %c0_28 = arith.constant 0 : index
    %c4 = arith.constant 4 : index
    %c0_29 = arith.constant 0 : index
    %29 = vector.load %arg1[%c0_28, %c4, %c0_29] : memref<5x5x512xf32, #tpu.memory_space<vmem>>, vector<1x1x512xf32>
    %30 = vector.shape_cast %29 : vector<1x1x512xf32> to vector<1x512xf32>
    %c1_30 = arith.constant 1 : index
    %c3_31 = arith.constant 3 : index
    %c0_32 = arith.constant 0 : index
    %31 = vector.load %arg1[%c1_30, %c3_31, %c0_32] : memref<5x5x512xf32, #tpu.memory_space<vmem>>, vector<1x1x512xf32>
    %32 = vector.shape_cast %31 : vector<1x1x512xf32> to vector<1x512xf32>
    %c1_33 = arith.constant 1 : index
    %c4_34 = arith.constant 4 : index
    %c0_35 = arith.constant 0 : index
    %33 = vector.load %arg1[%c1_33, %c4_34, %c0_35] : memref<5x5x512xf32, #tpu.memory_space<vmem>>, vector<1x1x512xf32>
    %34 = vector.shape_cast %33 : vector<1x1x512xf32> to vector<1x512xf32>
    %c2_36 = arith.constant 2 : index
    %c3_37 = arith.constant 3 : index
    %c0_38 = arith.constant 0 : index
    %35 = vector.load %arg1[%c2_36, %c3_37, %c0_38] : memref<5x5x512xf32, #tpu.memory_space<vmem>>, vector<1x1x512xf32>
    %36 = vector.shape_cast %35 : vector<1x1x512xf32> to vector<1x512xf32>
    %c2_39 = arith.constant 2 : index
    %c4_40 = arith.constant 4 : index
    %c0_41 = arith.constant 0 : index
    %37 = vector.load %arg1[%c2_39, %c4_40, %c0_41] : memref<5x5x512xf32, #tpu.memory_space<vmem>>, vector<1x1x512xf32>
    %38 = vector.shape_cast %37 : vector<1x1x512xf32> to vector<1x512xf32>
    %39 = arith.maximumf %28, %30 : vector<1x512xf32>
    %40 = arith.maximumf %32, %34 : vector<1x512xf32>
    %41 = arith.maximumf %36, %38 : vector<1x512xf32>
    %42 = arith.maximumf %39, %40 : vector<1x512xf32>
    %43 = arith.maximumf %42, %41 : vector<1x512xf32>
    %c1_42 = arith.constant 1 : index
    %c0_43 = arith.constant 0 : index
    %44 = vector.load %arg2[%c1_42, %c0_43] : memref<4x512xf32, #tpu.memory_space<vmem>>, vector<1x512xf32>
    tpu.vector_store %arg2[%c1_42, %c0_43], %43 {strides = array<i32>} : memref<4x512xf32, #tpu.memory_space<vmem>>, vector<1x512xf32>,
    %c3_44 = arith.constant 3 : index
    %c0_45 = arith.constant 0 : index
    %c0_46 = arith.constant 0 : index
    %45 = vector.load %arg1[%c3_44, %c0_45, %c0_46] : memref<5x5x512xf32, #tpu.memory_space<vmem>>, vector<1x1x512xf32>
    %46 = vector.shape_cast %45 : vector<1x1x512xf32> to vector<1x512xf32>
    %c3_47 = arith.constant 3 : index
    %c1_48 = arith.constant 1 : index
    %c0_49 = arith.constant 0 : index
    %47 = vector.load %arg1[%c3_47, %c1_48, %c0_49] : memref<5x5x512xf32, #tpu.memory_space<vmem>>, vector<1x1x512xf32>
    %48 = vector.shape_cast %47 : vector<1x1x512xf32> to vector<1x512xf32>
    %c3_50 = arith.constant 3 : index
    %c2_51 = arith.constant 2 : index
    %c0_52 = arith.constant 0 : index
    %49 = vector.load %arg1[%c3_50, %c2_51, %c0_52] : memref<5x5x512xf32, #tpu.memory_space<vmem>>, vector<1x1x512xf32>
    %50 = vector.shape_cast %49 : vector<1x1x512xf32> to vector<1x512xf32>
    %c4_53 = arith.constant 4 : index
    %c0_54 = arith.constant 0 : index
    %c0_55 = arith.constant 0 : index
    %51 = vector.load %arg1[%c4_53, %c0_54, %c0_55] : memref<5x5x512xf32, #tpu.memory_space<vmem>>, vector<1x1x512xf32>
    %52 = vector.shape_cast %51 : vector<1x1x512xf32> to vector<1x512xf32>
    %c4_56 = arith.constant 4 : index
    %c1_57 = arith.constant 1 : index
    %c0_58 = arith.constant 0 : index
    %53 = vector.load %arg1[%c4_56, %c1_57, %c0_58] : memref<5x5x512xf32, #tpu.memory_space<vmem>>, vector<1x1x512xf32>
    %54 = vector.shape_cast %53 : vector<1x1x512xf32> to vector<1x512xf32>
    %c4_59 = arith.constant 4 : index
    %c2_60 = arith.constant 2 : index
    %c0_61 = arith.constant 0 : index
    %55 = vector.load %arg1[%c4_59, %c2_60, %c0_61] : memref<5x5x512xf32, #tpu.memory_space<vmem>>, vector<1x1x512xf32>
    %56 = vector.shape_cast %55 : vector<1x1x512xf32> to vector<1x512xf32>
    %57 = arith.maximumf %46, %48 : vector<1x512xf32>
    %58 = arith.maximumf %50, %52 : vector<1x512xf32>
    %59 = arith.maximumf %54, %56 : vector<1x512xf32>
    %60 = arith.maximumf %57, %58 : vector<1x512xf32>
    %61 = arith.maximumf %60, %59 : vector<1x512xf32>
    %c2_62 = arith.constant 2 : index
    %c0_63 = arith.constant 0 : index
    %62 = vector.load %arg2[%c2_62, %c0_63] : memref<4x512xf32, #tpu.memory_space<vmem>>, vector<1x512xf32>
    tpu.vector_store %arg2[%c2_62, %c0_63], %61 {strides = array<i32>} : memref<4x512xf32, #tpu.memory_space<vmem>>, vector<1x512xf32>,
    %c3_64 = arith.constant 3 : index
    %c3_65 = arith.constant 3 : index
    %c0_66 = arith.constant 0 : index
    %63 = vector.load %arg1[%c3_64, %c3_65, %c0_66] : memref<5x5x512xf32, #tpu.memory_space<vmem>>, vector<1x1x512xf32>
    %64 = vector.shape_cast %63 : vector<1x1x512xf32> to vector<1x512xf32>
    %c3_67 = arith.constant 3 : index
    %c4_68 = arith.constant 4 : index
    %c0_69 = arith.constant 0 : index
    %65 = vector.load %arg1[%c3_67, %c4_68, %c0_69] : memref<5x5x512xf32, #tpu.memory_space<vmem>>, vector<1x1x512xf32>
    %66 = vector.shape_cast %65 : vector<1x1x512xf32> to vector<1x512xf32>
    %c4_70 = arith.constant 4 : index
    %c3_71 = arith.constant 3 : index
    %c0_72 = arith.constant 0 : index
    %67 = vector.load %arg1[%c4_70, %c3_71, %c0_72] : memref<5x5x512xf32, #tpu.memory_space<vmem>>, vector<1x1x512xf32>
    %68 = vector.shape_cast %67 : vector<1x1x512xf32> to vector<1x512xf32>
    %c4_73 = arith.constant 4 : index
    %c4_74 = arith.constant 4 : index
    %c0_75 = arith.constant 0 : index
    %69 = vector.load %arg1[%c4_73, %c4_74, %c0_75] : memref<5x5x512xf32, #tpu.memory_space<vmem>>, vector<1x1x512xf32>
    %70 = vector.shape_cast %69 : vector<1x1x512xf32> to vector<1x512xf32>
    %71 = arith.maximumf %64, %66 : vector<1x512xf32>
    %72 = arith.maximumf %68, %70 : vector<1x512xf32>
    %73 = arith.maximumf %71, %72 : vector<1x512xf32>
    %c3_76 = arith.constant 3 : index
    %c0_77 = arith.constant 0 : index
    %74 = vector.load %arg2[%c3_76, %c0_77] : memref<4x512xf32, #tpu.memory_space<vmem>>, vector<1x512xf32>
    tpu.vector_store %arg2[%c3_76, %c0_77], %73 {strides = array<i32>} : memref<4x512xf32, #tpu.memory_space<vmem>>, vector<1x512xf32>,
    return
  }
  func.func @transform_0(%arg0: i32) -> (i32, i32, i32) {
    %c0_i32 = arith.constant 0 : i32
    %c0_i32_0 = arith.constant 0 : i32
    %c0_i32_1 = arith.constant 0 : i32
    return %c0_i32, %c0_i32_0, %arg0 : i32, i32, i32
  }
  func.func @transform_1(%arg0: i32) -> (i32, i32) {
    %c0_i32 = arith.constant 0 : i32
    %c0_i32_0 = arith.constant 0 : i32
    return %c0_i32, %arg0 : i32, i32
  }
}

</mosaic_0001>

<bundles_post_ra>
// kernel: tpu_custom_call.1
= control target key start
LH: loop header
LB: loop body
LE: loop exit
PB: predicated region body
PF: predicated region fallthrough
CT: control target
= control target key end

     0   :  { %6 = vsyncpa [#allocation3], 0  ;;  %s237_s0 = inlined_call_operand.hbm [shape: f32[5,5,512], index: 0, kind: input, shape index: {}]   ;;  %s238_s1 = inlined_call_operand.hbm [shape: f32[4,512], index: 1, kind: output, shape index: {}]  }
   0x1   :  { %7 = vsyncpa [#allocation4], 0  ;;  %s187_s6 = smov [#allocation2]   ;;  %s139_s10 = scalar_lea.hbm %s237_s0, 2560 }
   0x2   :  { %s13_s7 = sshll.u32 %s187_s6, 4  ;;  %p140_p0 = scmp.ne.s32.totalorder %s237_s0, %s139_s10  ;;  %s14_s7 = int_to_ptr.vmem [resolvable:$true] %s13_s7 }
   0x3   :  { %p143_p1 = scmp.lt.u32.totalorder %s139_s10, %s237_s0 }
   0x5   :  { %p145_p2 = pnand %p143_p1, %p140_p0 }
   0x7   :  { %148 = shalt.err (!%p145_p2)
}
   0x8   :  { %s149_s15 = scalar_lea.vmem %s14_s7, 2560  ;;  %p154_p4 = scmp.lt.s32.totalorder %s14_s7, %s14_s7 }
   0x9   :  { %p150_p3 = scmp.ne.s32.totalorder %s14_s7, %s149_s15  ;;  %p155_p5 = scmp.lt.s32.totalorder %s149_s15, %s149_s15 }
   0xb   :  { %p156_p6 = por %p155_p5, %p154_p4 }
   0xd   :  { %p157_p7 = pnand %p156_p6, %p150_p3 }
   0xf   :  { %160 = shalt.err (!%p157_p7)
}
  0x10   :  { %s188_s16 = smov 512   ;;  %s189_s17 = smov 32  }
  0x11   :  { %19 = dma.hbm_to_vmem [thread:$0]  %s237_s0, 2560, %s14_s7, [#allocation3], %s188_s16, %s188_s16, %s189_s17  }
  0x12   :  { %183 = dma.done.wait [#allocation3], 2560  }
  0x13   :  { %184 = vsyncadd [#allocation3], 4294964736  ;;  %v23_v0 = vld [vmem:[#allocation2] ss:$8 sm:$0xf]  ;;  %v48_v2 = vlaneseq  ;;  %s190_s0 = smov [#allocation5]  }
  0x14   :  { %v25_v1 = vld [vmem:[#allocation2 + $0x1] ss:$8 sm:$0xf]  ;;  %v27_v3 = vld [vmem:[#allocation2 + $0x2] ss:$8 sm:$0xf] }
  0x15   :  { %v29_v4 = vld [vmem:[#allocation2 + $0x20] ss:$8 sm:$0xf]  ;;  %v40_v5 = vmax.f32 %v23_v0, %v25_v1  ;;  %v31_v6 = vld [vmem:[#allocation2 + $0x21] ss:$8 sm:$0xf] }
  0x16   :  { %v33_v7 = vld [vmem:[#allocation2 + $0x22] ss:$8 sm:$0xf]  ;;  %v41_v8 = vmax.f32 %v27_v3, %v29_v4  ;;  %v35_v9 = vld [vmem:[#allocation2 + $0x40] ss:$8 sm:$0xf] }
  0x17   :  { %v37_v10 = vld [vmem:[#allocation2 + $0x41] ss:$8 sm:$0xf]  ;;  %v42_v11 = vmax.f32 %v31_v6, %v33_v7  ;;  %vm213_vm0 = vcmp.lt.s32.totalorder %v48_v2, 512  ;;  %s110_s20 = sshll.u32 %s190_s0, 4  ;;  %s111_s20 = int_to_ptr.vmem [resolvable:$true] %s110_s20 }
  0x18   :  { %v43_v12 = vmax.f32 %v35_v9, %v37_v10  ;;  %v44_v13 = vmax.f32 %v40_v5, %v41_v8  ;;  %v54_v15 = vld [vmem:[#allocation2 + $0x3] ss:$8 sm:$0xf]  ;;  %v39_v16 = vld [vmem:[#allocation2 + $0x42] ss:$8 sm:$0xf]  ;;  %p166_p9 = scmp.lt.s32.totalorder %s111_s20, %s111_s20 }
  0x19   :  { %v56_v17 = vld [vmem:[#allocation2 + $0x4] ss:$8 sm:$0xf]  ;;  %v58_v18 = vld [vmem:[#allocation2 + $0x23] ss:$8 sm:$0xf] }
  0x1a   :  { %v45_v19 = vmax.f32 %v42_v11, %v43_v12  ;;  %v60_v20 = vld [vmem:[#allocation2 + $0x24] ss:$8 sm:$0xf]  ;;  %v62_v21 = vld [vmem:[#allocation2 + $0x43] ss:$8 sm:$0xf]  ;;  %v65_v22 = vmax.f32 %v54_v15, %v56_v17 }
  0x1b   :  { %v64_v23 = vld [vmem:[#allocation2 + $0x44] ss:$8 sm:$0xf]  ;;  %v66_v24 = vmax.f32 %v58_v18, %v60_v20  ;;  %v73_v25 = vld [vmem:[#allocation2 + $0x60] ss:$8 sm:$0xf] }
  0x1c   :  { %v46_v26 = vmax.f32 %v44_v13, %v45_v19  ;;  %v67_v27 = vmax.f32 %v62_v21, %v64_v23  ;;  %v75_v28 = vld [vmem:[#allocation2 + $0x61] ss:$8 sm:$0xf]  ;;  %v77_v29 = vld [vmem:[#allocation2 + $0x62] ss:$8 sm:$0xf] }
  0x1d   :  { %v68_v30 = vmax.f32 %v65_v22, %v66_v24  ;;  %v79_v31 = vld [vmem:[#allocation2 + $0x80] ss:$8 sm:$0xf]  ;;  %v81_v32 = vld [vmem:[#allocation2 + $0x81] ss:$8 sm:$0xf]  ;;  %v84_v33 = vmax.f32 %v73_v25, %v75_v28 }
  0x1e   :  { %v47_v34 = vmax.f32 %v46_v26, %v39_v16  ;;  %v83_v35 = vld [vmem:[#allocation2 + $0x82] ss:$8 sm:$0xf]  ;;  %v85_v36 = vmax.f32 %v77_v29, %v79_v31  ;;  %v92_v37 = vld [vmem:[#allocation2 + $0x63] ss:$8 sm:$0xf] }
  0x1f   :  { %v69_v38 = vmax.f32 %v68_v30, %v67_v27  ;;  %v86_v39 = vmax.f32 %v81_v32, %v83_v35  ;;  %v94_v40 = vld [vmem:[#allocation2 + $0x64] ss:$8 sm:$0xf]  ;;  %v96_v41 = vld [vmem:[#allocation2 + $0x83] ss:$8 sm:$0xf] }
  0x20   :  { %52 = vst.msk [vmem:[#allocation5] ss:$4 sm:$0xf] %vm213_vm0, %v47_v34  ;;  %v87_v42 = vmax.f32 %v84_v33, %v85_v36  ;;  %v98_v43 = vld [vmem:[#allocation2 + $0x84] ss:$8 sm:$0xf]  ;;  %v99_v44 = vmax.f32 %v92_v37, %v94_v40 }
  0x21   :  { %71 = vst.msk [vmem:[#allocation5 + $0x1] ss:$4 sm:$0xf] %vm213_vm0, %v69_v38  ;;  %v100_v45 = vmax.f32 %v96_v41, %v98_v43  ;;  %s161_s21 = scalar_lea.vmem %s111_s20, 256 }
  0x22   :  { %v88_v46 = vmax.f32 %v87_v42, %v86_v39  ;;  %p162_p8 = scmp.ne.s32.totalorder %s111_s20, %s161_s21  ;;  %p167_p10 = scmp.lt.s32.totalorder %s161_s21, %s161_s21 }
  0x23   :  { %v101_v47 = vmax.f32 %v99_v44, %v100_v45 }
  0x24   :  { %90 = vst.msk [vmem:[#allocation5 + $0x2] ss:$4 sm:$0xf] %vm213_vm0, %v88_v46  ;;  %p168_p11 = por %p167_p10, %p166_p9 }
  0x25   :  { %103 = vst.msk [vmem:[#allocation5 + $0x3] ss:$4 sm:$0xf] %vm213_vm0, %v101_v47 }
  0x26   :  { %p169_p12 = pnand %p168_p11, %p162_p8 }
  0x28   :  { %172 = shalt.err (!%p169_p12)
}
  0x29   :  { %s173_s24 = scalar_lea.hbm %s238_s1, 256 }
  0x2a   :  { %p174_p13 = scmp.ne.s32.totalorder %s238_s1, %s173_s24  ;;  %p177_p0 = scmp.lt.u32.totalorder %s173_s24, %s238_s1 }
  0x2c   :  { %p179_p1 = pnand %p177_p0, %p174_p13 }
  0x2e   :  { %182 = shalt.err (!%p179_p1)
}
  0x2f   :  { %113 = dma.vmem_to_hbm [thread:$0]  %s111_s20, 256, %s238_s1, [#allocation4]  }
  0x30   :  { %185 = dma.done.wait [#allocation4], 256  }
  0x31   :  { %186 = vsyncadd [#allocation4], 4294967040 }
  0x32   :  { %117 = vsyncpa [#allocation3], 1 }
  0x33   :  { %118 = vsyncpa [#allocation4], 1 }

</bundles_post_ra>
